<compile_context>
chip_gen: v6e
topology: v6e:2x2x1
jax: 0.10.0
libtpu: 0.0.40
codegen_flags: <defaults>
</compile_context>

<pallas_src>
import functools

import jax
import jax.numpy as jnp
from jax.experimental import pallas as pl
from jax.experimental.pallas import tpu as pltpu


def _round_up(x, m):
    return ((x + m - 1) // m) * m


def _mlp_kernel(x_ref, *refs, num_layers):
    """refs = (w0, b0, w1, b1, ..., w_{L-1}, b_{L-1}, out_ref)."""
    out_ref = refs[-1]
    wb_refs = refs[:-1]

    # Keep the running activation in f32 registers/VMEM for the whole chain.
    h = x_ref[...].astype(jnp.float32)
    for layer in range(num_layers):
        w = wb_refs[2 * layer][...].astype(jnp.float32)
        b = wb_refs[2 * layer + 1][...].astype(jnp.float32)      # shape (1, D_out)
        h = jnp.dot(h, w, preferred_element_type=jnp.float32) + b
        if layer < num_layers - 1:
            h = jnp.maximum(h, 0.0)                              # fused ReLU
    out_ref[...] = h.astype(out_ref.dtype)


def mlp_forward(x, weights, biases, *, tile_m=128):
    """Pallas-backed equivalent of MLP(layer_sizes).forward(x).

    weights[i] has shape (layer_sizes[i], layer_sizes[i+1]) (i.e. already
    transposed relative to torch.nn.Linear.weight); biases[i] has shape
    (layer_sizes[i+1],).  x has shape (..., layer_sizes[0]).
    """
    num_layers = len(weights)
    assert num_layers == len(biases) and num_layers >= 1

    d_in = weights[0].shape[0]
    d_out = weights[-1].shape[1]
    lead_shape = x.shape[:-1]
    assert x.shape[-1] == d_in, "input feature dim does not match layer_sizes[0]"

    # Flatten all leading dims into M (torch Linear applies over the last dim).
    x2d = x.reshape(-1, d_in)
    m = x2d.shape[0]

    # Batch tile: multiple of 8 (sublane), capped at tile_m; pad M up so the
    # grid divides evenly (padded rows are sliced off afterwards).
    tm = min(tile_m, _round_up(m, 8))
    m_pad = _round_up(m, tm)
    if m_pad != m:
        x2d = jnp.pad(x2d, ((0, m_pad - m), (0, 0)))

    # Biases as (1, D) slabs so they are 2-D full-array VMEM blocks.
    biases_2d = [b.reshape(1, -1) for b in biases]

    # BlockSpecs: input/output tiled on M; every weight/bias is one full block
    # resident in VMEM for all grid steps (index_map constant).
    in_specs = [pl.BlockSpec((tm, d_in), lambda i: (i, 0))]
    operands = [x2d]
    for w, b in zip(weights, biases_2d):
        in_specs.append(pl.BlockSpec(w.shape, lambda i: (0, 0)))
        in_specs.append(pl.BlockSpec(b.shape, lambda i: (0, 0)))
        operands.append(w)
        operands.append(b)

    out = pl.pallas_call(
        functools.partial(_mlp_kernel, num_layers=num_layers),
        out_shape=jax.ShapeDtypeStruct((m_pad, d_out), x.dtype),
        grid_spec=pltpu.PrefetchScalarGridSpec(
            num_scalar_prefetch=0,
            grid=(m_pad // tm,),
            in_specs=in_specs,
            out_specs=pl.BlockSpec((tm, d_out), lambda i: (i, 0)),
        ),
        compiler_params=pltpu.CompilerParams(
            dimension_semantics=("parallel",),
        ),
    )(*operands)

    out = out[:m]
    return out.reshape(*lead_shape, d_out)


def _mlp_reference(x, weights, biases):
    """Pure-JAX reference mirroring the PyTorch module."""
    h = x.astype(jnp.float32)
    for i, (w, b) in enumerate(zip(weights, biases)):
        h = h @ w.astype(jnp.float32) + b.astype(jnp.float32)
        if i < len(weights) - 1:
            h = jnp.maximum(h, 0.0)
    return h.astype(x.dtype)


if __name__ == "__main__":
    key = jax.random.PRNGKey(0)

    # Small MLP: layer_sizes = [32, 64, 64, 16], batch = 16, f32 (torch default).
    layer_sizes = [32, 64, 64, 16]
    batch = 16

    keys = jax.random.split(key, 2 * (len(layer_sizes) - 1) + 1)
    x = jax.random.normal(keys[0], (batch, layer_sizes[0]), dtype=jnp.float32)

    weights, biases = [], []
    for li, (fan_in, fan_out) in enumerate(zip(layer_sizes[:-1], layer_sizes[1:])):
        bound = 1.0 / (fan_in ** 0.5)   # torch.nn.Linear default init range
        w = jax.random.uniform(keys[1 + 2 * li], (fan_in, fan_out),
                               minval=-bound, maxval=bound, dtype=jnp.float32)
        b = jax.random.uniform(keys[2 + 2 * li], (fan_out,),
                               minval=-bound, maxval=bound, dtype=jnp.float32)
        weights.append(w)
        biases.append(b)

    y = mlp_forward(x, weights, biases)
    y = jax.block_until_ready(y)

    y_ref = _mlp_reference(x, weights, biases)
    assert y.shape == (batch, layer_sizes[-1])
    assert jnp.allclose(y, y_ref, rtol=1e-5, atol=1e-5), "mismatch vs reference"

    print("KERNEL_OK")
</pallas_src>

<mosaic_0001>
module attributes {stable_mosaic.version = 11 : i64} {
  func.func @_mlp_kernel(%arg0: i32, %arg1: memref<16x32xf32, #tpu.memory_space<vmem>>, %arg2: memref<32x64xf32, #tpu.memory_space<vmem>>, %arg3: memref<1x64xf32, #tpu.memory_space<vmem>>, %arg4: memref<64x64xf32, #tpu.memory_space<vmem>>, %arg5: memref<1x64xf32, #tpu.memory_space<vmem>>, %arg6: memref<64x16xf32, #tpu.memory_space<vmem>>, %arg7: memref<1x16xf32, #tpu.memory_space<vmem>>, %arg8: memref<16x16xf32, #tpu.memory_space<vmem>>) attributes {dimension_semantics = [#tpu.dimension_semantics<parallel>], iteration_bounds = array<i64: 1>, scalar_prefetch = 0 : i64, scratch_operands = 0 : i64, tpu.core_type = #tpu.core_type<tc>, window_params = [{transform_indices = @transform_0, window_bounds = array<i64: 16, 32>}, {pipeline_mode = #tpu.pipeline_mode<synchronous>, transform_indices = @transform_1, window_bounds = array<i64: 32, 64>}, {pipeline_mode = #tpu.pipeline_mode<synchronous>, transform_indices = @transform_2, window_bounds = array<i64: 1, 64>}, {pipeline_mode = #tpu.pipeline_mode<synchronous>, transform_indices = @transform_3, window_bounds = array<i64: 64, 64>}, {pipeline_mode = #tpu.pipeline_mode<synchronous>, transform_indices = @transform_4, window_bounds = array<i64: 1, 64>}, {pipeline_mode = #tpu.pipeline_mode<synchronous>, transform_indices = @transform_5, window_bounds = array<i64: 64, 16>}, {pipeline_mode = #tpu.pipeline_mode<synchronous>, transform_indices = @transform_6, window_bounds = array<i64: 1, 16>}, {transform_indices = @transform_7, window_bounds = array<i64: 16, 16>}]} {
    %c0 = arith.constant 0 : index
    %c0_0 = arith.constant 0 : index
    %0 = vector.load %arg1[%c0, %c0_0] : memref<16x32xf32, #tpu.memory_space<vmem>>, vector<16x32xf32>
    %c0_1 = arith.constant 0 : index
    %c0_2 = arith.constant 0 : index
    %1 = vector.load %arg2[%c0_1, %c0_2] : memref<32x64xf32, #tpu.memory_space<vmem>>, vector<32x64xf32>
    %c0_3 = arith.constant 0 : index
    %c0_4 = arith.constant 0 : index
    %2 = vector.load %arg3[%c0_3, %c0_4] : memref<1x64xf32, #tpu.memory_space<vmem>>, vector<1x64xf32>
    %cst = arith.constant dense<0.000000e+00> : vector<16x64xf32>
    %3 = tpu.matmul %0, %1, %cst {dimension_numbers = #tpu.dot_dimension_numbers<[1], [0], [0], [1], [0, 0, 1, 1], [], []>} : vector<16x32xf32>, vector<32x64xf32>, vector<16x64xf32> -> vector<16x64xf32>
    %4 = vector.broadcast %2 : vector<1x64xf32> to vector<16x64xf32>
    %5 = arith.addf %3, %4 : vector<16x64xf32>
    %cst_5 = arith.constant 0.000000e+00 : f32
    %6 = vector.broadcast %cst_5 : f32 to vector<16x64xf32>
    %7 = arith.maximumf %5, %6 : vector<16x64xf32>
    %c0_6 = arith.constant 0 : index
    %c0_7 = arith.constant 0 : index
    %8 = vector.load %arg4[%c0_6, %c0_7] : memref<64x64xf32, #tpu.memory_space<vmem>>, vector<64x64xf32>
    %c0_8 = arith.constant 0 : index
    %c0_9 = arith.constant 0 : index
    %9 = vector.load %arg5[%c0_8, %c0_9] : memref<1x64xf32, #tpu.memory_space<vmem>>, vector<1x64xf32>
    %cst_10 = arith.constant dense<0.000000e+00> : vector<16x64xf32>
    %10 = tpu.matmul %7, %8, %cst_10 {dimension_numbers = #tpu.dot_dimension_numbers<[1], [0], [0], [1], [0, 0, 1, 1], [], []>} : vector<16x64xf32>, vector<64x64xf32>, vector<16x64xf32> -> vector<16x64xf32>
    %11 = vector.broadcast %9 : vector<1x64xf32> to vector<16x64xf32>
    %12 = arith.addf %10, %11 : vector<16x64xf32>
    %cst_11 = arith.constant 0.000000e+00 : f32
    %13 = vector.broadcast %cst_11 : f32 to vector<16x64xf32>
    %14 = arith.maximumf %12, %13 : vector<16x64xf32>
    %c0_12 = arith.constant 0 : index
    %c0_13 = arith.constant 0 : index
    %15 = vector.load %arg6[%c0_12, %c0_13] : memref<64x16xf32, #tpu.memory_space<vmem>>, vector<64x16xf32>
    %c0_14 = arith.constant 0 : index
    %c0_15 = arith.constant 0 : index
    %16 = vector.load %arg7[%c0_14, %c0_15] : memref<1x16xf32, #tpu.memory_space<vmem>>, vector<1x16xf32>
    %cst_16 = arith.constant dense<0.000000e+00> : vector<16x16xf32>
    %17 = tpu.matmul %14, %15, %cst_16 {dimension_numbers = #tpu.dot_dimension_numbers<[1], [0], [0], [1], [0, 0, 1, 1], [], []>} : vector<16x64xf32>, vector<64x16xf32>, vector<16x16xf32> -> vector<16x16xf32>
    %18 = vector.broadcast %16 : vector<1x16xf32> to vector<16x16xf32>
    %19 = arith.addf %17, %18 : vector<16x16xf32>
    %c0_17 = arith.constant 0 : index
    %c0_18 = arith.constant 0 : index
    %20 = vector.load %arg8[%c0_17, %c0_18] : memref<16x16xf32, #tpu.memory_space<vmem>>, vector<16x16xf32>
    tpu.vector_store %arg8[%c0_17, %c0_18], %19 {strides = array<i32>} : memref<16x16xf32, #tpu.memory_space<vmem>>, vector<16x16xf32>,
    return
  }
  func.func @transform_0(%arg0: i32) -> (i32, i32) {
    %c0_i32 = arith.constant 0 : i32
    %c0_i32_0 = arith.constant 0 : i32
    return %arg0, %c0_i32 : i32, i32
  }
  func.func @transform_1(%arg0: i32) -> (i32, i32) {
    %c0_i32 = arith.constant 0 : i32
    %c0_i32_0 = arith.constant 0 : i32
    %c0_i32_1 = arith.constant 0 : i32
    return %c0_i32, %c0_i32_0 : i32, i32
  }
  func.func @transform_2(%arg0: i32) -> (i32, i32) {
    %c0_i32 = arith.constant 0 : i32
    %c0_i32_0 = arith.constant 0 : i32
    %c0_i32_1 = arith.constant 0 : i32
    return %c0_i32, %c0_i32_0 : i32, i32
  }
  func.func @transform_3(%arg0: i32) -> (i32, i32) {
    %c0_i32 = arith.constant 0 : i32
    %c0_i32_0 = arith.constant 0 : i32
    %c0_i32_1 = arith.constant 0 : i32
    return %c0_i32, %c0_i32_0 : i32, i32
  }
  func.func @transform_4(%arg0: i32) -> (i32, i32) {
    %c0_i32 = arith.constant 0 : i32
    %c0_i32_0 = arith.constant 0 : i32
    %c0_i32_1 = arith.constant 0 : i32
    return %c0_i32, %c0_i32_0 : i32, i32
  }
  func.func @transform_5(%arg0: i32) -> (i32, i32) {
    %c0_i32 = arith.constant 0 : i32
    %c0_i32_0 = arith.constant 0 : i32
    %c0_i32_1 = arith.constant 0 : i32
    return %c0_i32, %c0_i32_0 : i32, i32
  }
  func.func @transform_6(%arg0: i32) -> (i32, i32) {
    %c0_i32 = arith.constant 0 : i32
    %c0_i32_0 = arith.constant 0 : i32
    %c0_i32_1 = arith.constant 0 : i32
    return %c0_i32, %c0_i32_0 : i32, i32
  }
  func.func @transform_7(%arg0: i32) -> (i32, i32) {
    %c0_i32 = arith.constant 0 : i32
    %c0_i32_0 = arith.constant 0 : i32
    return %arg0, %c0_i32 : i32, i32
  }
}

</mosaic_0001>

<bundles_post_ra>
// kernel: tpu_custom_call.1
= control target key start
LH: loop header
LB: loop body
LE: loop exit
PB: predicated region body
PF: predicated region fallthrough
CT: control target
= control target key end

     0   :  { %12 = vsyncpa [#allocation3], 0  ;;  %s610_s0 = inlined_call_operand.vmem [shape: f32[16,32], index: 0, kind: input, shape index: {}]   ;;  %s611_s1 = inlined_call_operand.hbm [shape: f32[32,64], index: 1, kind: input, shape index: {}]   ;;  %s612_s2 = inlined_call_operand.vmem [shape: f32[1,64], index: 2, kind: input, shape index: {}]   ;;  %s613_s3 = inlined_call_operand.vmem [shape: f32[64,64], index: 3, kind: input, shape index: {}]   ;;  %s614_s4 = inlined_call_operand.vmem [shape: f32[1,64], index: 4, kind: input, shape index: {}]   ;;  %s615_s5 = inlined_call_operand.vmem [shape: f32[64,16], index: 5, kind: input, shape index: {}]   ;;  %s616_s6 = inlined_call_operand.vmem [shape: f32[1,16], index: 6, kind: input, shape index: {}]   ;;  %s617_s7 = inlined_call_operand.hbm [shape: f32[16,16], index: 7, kind: output, shape index: {}]  }
   0x1   :  { %13 = vsyncpa [#allocation4], 0  ;;  %s485_s24 = smov [#allocation2]  }
   0x2   :  { %s21_s25 = sshll.u32 %s485_s24, 4  ;;  %s22_s25 = int_to_ptr.vmem [resolvable:$true] %s21_s25 }
   0x3   :  { %s449_s26 = scalar_lea.vmem %s22_s25, 512  ;;  %p454_p1 = scmp.lt.s32.totalorder %s22_s25, %s22_s25 }
   0x4   :  { %p450_p0 = scmp.ne.s32.totalorder %s22_s25, %s449_s26  ;;  %p455_p2 = scmp.lt.s32.totalorder %s449_s26, %s449_s26 }
   0x6   :  { %p456_p3 = por %p455_p2, %p454_p1 }
   0x8   :  { %p457_p4 = pnand %p456_p3, %p450_p0 }
   0xa   :  { %460 = shalt.err (!%p457_p4)
}
   0xb   :  { %s486_s27 = smov 128   ;;  %s487_s28 = smov 8  }
   0xc   :  { %27 = dma.hbm_to_vmem [thread:$0]  %s611_s1, 512, %s22_s25, [#allocation3], %s486_s27, %s486_s27, %s487_s28  }
   0xd   :  { %481 = dma.done.wait [#allocation3], 512  }
   0xe   :  { %482 = vsyncadd [#allocation3], 4294966784  ;;  %vm54_vm0 = vcmask 261120   ;;  %v46_v0 = vld [vmem:[#allocation2 + $0x18] sm:$0xff]  ;;  %v45_v1 = vld [vmem:[#allocation2 + $0x10] sm:$0xff]  ;;  %vm153_vm1 = vcmask 523264  }
   0xf   :  { %388 = vmatprep.subr.mxu0 %v46_v0  ;;  %v41_v2 = vld [vmem:[%s610_s0] sm:$0xff]  ;;  %v44_v3 = vld [vmem:[#allocation2 + $0x8] sm:$0xff]  ;;  %v145_v4 = vld [vmem:[%s613_s3 + $0x38] sm:$0xff]  ;;  %vm333_vm2 = vcmask 130048  }
  0x10   :  { %389 = vmatpush3.msra.mxu0 %v46_v0  ;;  %396 = vmatprep.mubr.msk.f32.mxu0 %vm54_vm0, %v41_v2  ;;  %v144_v5 = vld [vmem:[%s613_s3 + $0x30] sm:$0xff]  ;;  %v43_v6 = vld [vmem:[#allocation2] sm:$0xff]  ;;  %v143_v7 = vld [vmem:[%s613_s3 + $0x28] sm:$0xff] }
  0x11   :  { %390 = vmatprep.subr.mxu0 %v45_v1  ;;  %399 = vmatprep.subr.mxu1 %v145_v4  ;;  %v42_v8 = vld [vmem:[%s610_s0 + $0x8] sm:$0xff]  ;;  %v142_v9 = vld [vmem:[%s613_s3 + $0x20] sm:$0xff]  ;;  %v141_v10 = vld [vmem:[%s613_s3 + $0x18] sm:$0xff] }
  0x12   :  { %391 = vmatpush3.msra.mxu0 %v45_v1  ;;  %400 = vmatpush3.msra.mxu1 %v145_v4  ;;  %v140_v11 = vld [vmem:[%s613_s3 + $0x10] sm:$0xff]  ;;  %v139_v12 = vld [vmem:[%s613_s3 + $0x8] sm:$0xff]  ;;  %v138_v13 = vld [vmem:[%s613_s3] sm:$0xff] }
  0x13   :  { %392 = vmatprep.subr.mxu0 %v44_v3  ;;  %401 = vmatprep.subr.mxu1 %v144_v5  ;;  %v244_v14 = vld [vmem:[%s615_s5 + $0x38] sm:$0xff]  ;;  %v243_v15 = vld [vmem:[%s615_s5 + $0x30] sm:$0xff]  ;;  %v242_v16 = vld [vmem:[%s615_s5 + $0x28] sm:$0xff] }
  0x14   :  { %393 = vmatpush3.msra.mxu0 %v44_v3  ;;  %402 = vmatpush3.msra.mxu1 %v144_v5  ;;  %v241_v17 = vld [vmem:[%s615_s5 + $0x20] sm:$0xff]  ;;  %v240_v25 = vld [vmem:[%s615_s5 + $0x18] sm:$0xff]  ;;  %v239_v26 = vld [vmem:[%s615_s5 + $0x10] sm:$0xff] }
  0x15   :  { %394 = vmatprep.subr.mxu0 %v43_v6  ;;  %403 = vmatprep.subr.mxu1 %v143_v7  ;;  %v353_v18 = vld [vmem:[%s612_s2] ss:$0 sm:$0xff]  ;;  %v238_v27 = vld [vmem:[%s615_s5 + $0x8] sm:$0xff] }
  0x16   :  { %395 = vmatpush3.msra.mxu0 %v43_v6  ;;  %404 = vmatpush3.msra.mxu1 %v143_v7  ;;  %v237_v28 = vld [vmem:[%s615_s5] sm:$0xff]  ;;  %s488_s5 = smov [#allocation5]  }
  0x17   :  { %397 = vmatmul.mubr.msk.f32.vlgmr.msra.gmra.mxu0 %vm54_vm0, %v42_v8  ;;  %405 = vmatprep.subr.mxu1 %v142_v9  ;;  %v356_v29 = vld [vmem:[%s614_s4] ss:$0 sm:$0xff]  ;;  %s341_s23 = sshll.u32 %s488_s5, 4  ;;  %s342_s23 = int_to_ptr.vmem [resolvable:$true] %s341_s23 }
  0x18   :  { %406 = vmatpush3.msra.mxu1 %v142_v9  ;;  %418 = vmatprep.subr.mxu0 %v244_v14  ;;  %v359_v36 = vld [vmem:[%s616_s6] ss:$0 sm:$0xff]  ;;  %s461_s4 = scalar_lea.vmem %s342_s23, 256  ;;  %p466_p6 = scmp.lt.s32.totalorder %s342_s23, %s342_s23 }
  0x19   :  { %407 = vmatprep.subr.mxu1 %v141_v10  ;;  %419 = vmatpush3.msra.mxu0 %v244_v14  ;;  %p462_p5 = scmp.ne.s32.totalorder %s342_s23, %s461_s4  ;;  %p467_p7 = scmp.lt.s32.totalorder %s461_s4, %s461_s4 }
  0x1a   :  { %408 = vmatpush3.msra.mxu1 %v141_v10  ;;  %420 = vmatprep.subr.mxu0 %v243_v15 }
  0x1b   :  { %409 = vmatprep.subr.mxu1 %v140_v11  ;;  %421 = vmatpush3.msra.mxu0 %v243_v15  ;;  %p468_p8 = por %p467_p7, %p466_p6 }
  0x1c   :  { %410 = vmatpush3.msra.mxu1 %v140_v11  ;;  %422 = vmatprep.subr.mxu0 %v242_v16 }
  0x1d   :  { %411 = vmatprep.subr.mxu1 %v139_v12  ;;  %423 = vmatpush3.msra.mxu0 %v242_v16  ;;  %p469_p9 = pnand %p468_p8, %p462_p5 }
  0x1e   :  { %412 = vmatpush3.msra.mxu1 %v139_v12  ;;  %424 = vmatprep.subr.mxu0 %v241_v17 }
  0x1f   :  { %413 = vmatprep.subr.mxu1 %v138_v13  ;;  %425 = vmatpush3.msra.mxu0 %v241_v17 }
  0x20   :  { %414 = vmatpush3.msra.mxu1 %v138_v13  ;;  %426 = vmatprep.subr.mxu0 %v240_v25 }
  0x21   :  { %427 = vmatpush3.msra.mxu0 %v240_v25 }
  0x22   :  { %428 = vmatprep.subr.mxu0 %v239_v26 }
  0x23   :  { %429 = vmatpush3.msra.mxu0 %v239_v26 }
  0x24   :  { %430 = vmatprep.subr.mxu0 %v238_v27 }
  0x25   :  { %431 = vmatpush3.msra.mxu0 %v238_v27 }
  0x26   :  { %432 = vmatprep.subr.mxu0 %v237_v28 }
  0x27   :  { %433 = vmatpush3.msra.mxu0 %v237_v28 }
  0xd7   :  { %v398_v19 = vpop.f32.mrf.mxu0 }
  0xd8   :  { %v133_v20 = vadd.f32 %v398_v19, %v353_v18 }
  0xd9   :  { %v127_v21 = vpop.f32.mrf.mxu0 }
  0xda   :  { %v128_v22 = vadd.f32 %v353_v18, %v127_v21  ;;  %v137_v24 = vmax.f32 %v133_v20, 0.0 }
  0xdc   :  { %v136_v23 = vmax.f32 %v128_v22, 0.0 }
  0xde   :  { %415 = vmatprep.mubr.msk.f32.mxu1 %vm153_vm1, %v136_v23 }
  0xdf   :  { %416 = vmatmul.mubr.msk.f32.vlgmr.msra.gmra.mxu1 %vm153_vm1, %v137_v24 }
 0x19f   :  { %v417_v30 = vpop.f32.mrf.mxu1 }
 0x1a0   :  { %v232_v31 = vadd.f32 %v417_v30, %v356_v29 }
 0x1a1   :  { %v226_v32 = vpop.f32.mrf.mxu1 }
 0x1a2   :  { %v227_v33 = vadd.f32 %v356_v29, %v226_v32  ;;  %v236_v35 = vmax.f32 %v232_v31, 0.0 }
 0x1a4   :  { %v235_v34 = vmax.f32 %v227_v33, 0.0 }
 0x1a6   :  { %434 = vmatprep.mubr.msk.f32.mxu0 %vm153_vm1, %v235_v34 }
 0x1a7   :  { %435 = vmatmul.mubr.msk.f32.vlgmr.msra.gmra.mxu0 %vm153_vm1, %v236_v35 }
 0x267   :  { %v436_v37 = vpop.f32.mrf.mxu0 }
 0x268   :  { %v330_v38 = vadd.f32 %v436_v37, %v359_v36 }
 0x269   :  { %v324_v39 = vpop.f32.mrf.mxu0 }
 0x26a   :  { %v325_v40 = vadd.f32 %v359_v36, %v324_v39  ;;  %335 = vst.msk [vmem:[#allocation5 + $0x8] sm:$0xff] %vm333_vm2, %v330_v38 }
 0x26c   :  { %334 = vst.msk [vmem:[#allocation5] sm:$0xff] %vm333_vm2, %v325_v40 }
 0x26d   :  { %472 = shalt.err (!%p469_p9)
}
 0x26e   :  { %347 = dma.vmem_to_hbm [thread:$0]  %s342_s23, 256, %s617_s7, [#allocation4], %s486_s27, %s486_s27, %s487_s28  }
 0x26f   :  { %483 = dma.done.wait [#allocation4], 256  }
 0x270   :  { %484 = vsyncadd [#allocation4], 4294967040 }
 0x271   :  { %351 = vsyncpa [#allocation3], 1 }
 0x272   :  { %352 = vsyncpa [#allocation4], 1 }

</bundles_post_ra>
